<compile_context>
chip_gen: v6e
topology: v6e:2x2x1
jax: 0.10.0
libtpu: 0.0.40
codegen_flags: <defaults>
</compile_context>

<pallas_src>
import functools

import jax
import jax.numpy as jnp
from jax.experimental import pallas as pl
from jax.experimental.pallas import tpu as pltpu

NUM_CLASSES = 625  # 4 pentanary (base-5) weather digits: 5**4 = 625

# case-type string -> integer code (host-side; strings have no device repr)
_CASE_TO_CODE = {"rain": 1, "rime": 2, "snow": 3, "lightning": 4}

# packed side-band column layout: one (B, 8) int32 array, single DMA per step
_COL_TARGET = 0
_COL_CASE = 1
_COL_RAIN_DRY = 2
_COL_SNOW_DRY = 3
_COL_LIGHT_CALM = 4
_SIDE_COLS = 8


# ---------------------------------------------------------------------------
# Fused Pallas kernel: max + argmax (XLU), rewrite, row-sums on the MXU.
# ---------------------------------------------------------------------------
def _fused_loss_kernel(x_ref, side_ref, out_ref):
    x = x_ref[...].astype(jnp.float32)          # (TB, C): upcast in-kernel (bf16 fast path)
    tb, c = x.shape

    # Single (1, C) lane iota; broadcast into every comparison (never build a
    # (TB, C) iota -> saves a full VPU pass + ~2.5 MiB VMEM per 1024-row tile).
    idx = jax.lax.broadcasted_iota(jnp.int32, (1, c), 1).astype(jnp.float32)

    # --- XLU reduction #1: exact row max (stabilization + argmax anchor) -----
    m = jnp.max(x, axis=1, keepdims=True)                                   # (TB, 1)
    # --- XLU reduction #2: exact first-max argmax (torch tie-break) ----------
    amax = jnp.min(jnp.where(x == m, idx, float(c)), axis=1, keepdims=True)  # (TB, 1)

    # Base-5 digit decode of the predicted class.  floor((v + 0.5) / D) == v // D
    # exactly for v < 625 (fraction margin >= 0.004 >> f32 error).
    half = amax + 0.5
    q125 = jnp.floor(half * (1.0 / 125.0))     # v // 125
    q25 = jnp.floor(half * (1.0 / 25.0))       # v // 25
    q5 = jnp.floor(half * (1.0 / 5.0))         # v // 5
    calm = q125                                # calm_stormy  = v // 125
    clear = q25 - 5.0 * q125                   # clear_cloudy = (v // 25) % 5
    dry = q5 - 5.0 * q25                       # dry_wet      = (v // 5) % 5
    cold = amax - 5.0 * q5                     # cold_hot     = v % 5

    side = side_ref[...]                                        # (TB, 8) int32
    tgt = side[:, _COL_TARGET:_COL_TARGET + 1].astype(jnp.float32)
    case = side[:, _COL_CASE:_COL_CASE + 1]
    rain_dry = side[:, _COL_RAIN_DRY:_COL_RAIN_DRY + 1].astype(jnp.float32)
    snow_dry = side[:, _COL_SNOW_DRY:_COL_SNOW_DRY + 1].astype(jnp.float32)
    light_calm = side[:, _COL_LIGHT_CALM:_COL_LIGHT_CALM + 1].astype(jnp.float32)

    is_rain = case == 1
    is_rime = case == 2
    is_snow = case == 3
    is_light = case == 4

    dry_new = jnp.where(is_rain, rain_dry, jnp.where(is_snow, snow_dry, dry))
    calm_rain = jnp.where(rain_dry == 2.0, 3.0,
                          jnp.where(rain_dry >= 3.0, 4.0, calm))
    calm_new = jnp.where(is_rain, calm_rain, jnp.where(is_light, light_calm, calm))
    cold_new = jnp.where(is_rime | is_snow, 0.0, cold)

    rewritten = cold_new + 5.0 * dry_new + 25.0 * clear + 125.0 * calm_new
    is_special = is_rain | is_rime | is_snow | is_light
    new_t = jnp.where(is_special, rewritten, tgt)                # (TB, 1), exact integers

    # --- Row sums on the MXU (otherwise idle) instead of the XLU -------------
    # lse - x[t] = (m + log(sum_j e_j)) - (m + log(e_t)) = log(sum_e) - log(e_t)
    # with e = exp(x - m), so both the normalizer and the target gather become
    # dots of (TB, C) bf16 against a (C, 128) bf16 ones matrix (column 0 kept).
    e = jnp.exp(x - m)                                           # (TB, C) f32, in (0, 1]
    e_bf = e.astype(jnp.bfloat16)
    ones_rhs = jnp.ones((c, 128), dtype=jnp.bfloat16)
    sum_e = jnp.dot(e_bf, ones_rhs, preferred_element_type=jnp.float32)[:, 0:1]
    picked_bf = jnp.where(idx == new_t, e_bf, 0).astype(jnp.bfloat16)
    picked_e = jnp.dot(picked_bf, ones_rhs, preferred_element_type=jnp.float32)[:, 0:1]

    # Per-row CE contribution.  (Rows of a partial last tile hold garbage but
    # are masked out of the writeback by Pallas.)
    out_ref[...] = jnp.log(sum_e) - jnp.log(picked_e)


# ---------------------------------------------------------------------------
# pallas_call wrapper
# ---------------------------------------------------------------------------
def _default_tile_rows(batch):
    # Target ~8 grid steps so the BlockSpec pipeline overlaps DMA with compute
    # (a 1-step grid has no overlap) and core-parallel sharding has work to
    # split; cap at 1024 rows (VMEM) and floor at 8 (sublane tile).
    tb = 8 * pl.cdiv(pl.cdiv(batch, 8), 8)     # round_up(cdiv(batch, 8), 8)
    return int(max(8, min(1024, tb)))


def _pallas_per_row_loss(outputs, side, tb=None, core_parallel=False):
    B, C = outputs.shape
    tb = _default_tile_rows(B) if tb is None else int(tb)
    tb = max(8, min(tb, 8 * pl.cdiv(B, 8)))    # never larger than the padded batch
    grid = (pl.cdiv(B, tb),)

    cost = pl.CostEstimate(
        flops=int(4 * B * C * 128 + 16 * B * C),       # 2 MXU dots + elementwise
        transcendentals=int(B * C + 2 * B),            # exp over logits + 2 logs/row
        bytes_accessed=int(B * C * outputs.dtype.itemsize + B * _SIDE_COLS * 4 + B * 4),
    )

    # TODO(synk): on v7x, pass core_parallel=True to shard batch tiles across the
    # 2 TensorCores; kept opt-in since plain PARALLEL is the portable default.
    sem = ((pltpu.CORE_PARALLEL,) if core_parallel else (pltpu.PARALLEL,))

    return pl.pallas_call(
        _fused_loss_kernel,
        out_shape=jax.ShapeDtypeStruct((B, 1), jnp.float32),
        grid=grid,
        in_specs=[
            pl.BlockSpec((tb, C), lambda i: (i, 0)),             # logits (native dtype)
            pl.BlockSpec((tb, _SIDE_COLS), lambda i: (i, 0)),    # packed side-band ints
        ],
        out_specs=pl.BlockSpec((tb, 1), lambda i: (i, 0)),
        compiler_params=pltpu.CompilerParams(
            dimension_semantics=sem,
            # Explicit budget: ~16-18 MiB live at tb=1024; 48 MiB clears v5e's
            # 16 MiB scoped default and stays under v7x's 64 MiB physical VMEM.
            vmem_limit_bytes=48 * 1024 * 1024,
        ),
        cost_estimate=cost,
    )(outputs, side)


# ---------------------------------------------------------------------------
# Wrapper: host string->code mapping + jax.random digits + jitted device graph
# ---------------------------------------------------------------------------
def _case_codes(special_case):
    # TODO(synk): Python string case types are inherently host data; mapped to
    # int codes on the host (the only non-device step).
    return jnp.asarray([_CASE_TO_CODE.get(c, 0) for c in special_case],
                       dtype=jnp.int32)


def _draw_random_digits(key, batch):
    # Device-side replacement for the module's global random.randint calls.
    k1, k2, k3 = jax.random.split(key, 3)
    return jnp.stack(
        [
            jax.random.randint(k1, (batch,), 1, 5, dtype=jnp.int32),  # rain: dry_wet 1..4
            jax.random.randint(k2, (batch,), 1, 3, dtype=jnp.int32),  # snow: dry_wet 1..2
            jax.random.randint(k3, (batch,), 2, 5, dtype=jnp.int32),  # lightning: calm 2..4
        ],
        axis=1,
    )


@functools.partial(jax.jit, static_argnames=("tb", "core_parallel"))
def _loss_core(outputs, targets, case_codes, rnd, tb=None, core_parallel=False):
    B, _ = outputs.shape
    # Pack all per-row integer side data into one (B, 8) int32 array -> one DMA
    # per grid step instead of three narrow ones.
    side = jnp.concatenate(
        [
            targets.reshape(B, 1).astype(jnp.int32),
            case_codes.reshape(B, 1).astype(jnp.int32),
            rnd.reshape(B, 3).astype(jnp.int32),
            jnp.zeros((B, _SIDE_COLS - 5), jnp.int32),
        ],
        axis=1,
    )
    per_row = _pallas_per_row_loss(outputs, side, tb=tb, core_parallel=core_parallel)
    return jnp.mean(per_row)  # mean over B floats: trivial XLA work


def custom_loss(outputs, targets, special_case, key=None, tb=None, core_parallel=False):
    """Forward pass of CustomLoss (cross-entropy with weather-case target rewrite).

    `outputs` may be f32 or (preferably) bf16 -- the kernel upcasts in VMEM, so
    bf16 callers halve the HBM traffic of the dominant logits read.
    """
    B, _ = outputs.shape
    assert len(special_case) == B
    if key is None:
        key = jax.random.PRNGKey(0)
    case_codes = _case_codes(special_case)       # host: Python strings -> int codes
    rnd = _draw_random_digits(key, B)
    return _loss_core(outputs, jnp.asarray(targets), case_codes, rnd,
                      tb=tb, core_parallel=core_parallel)


# ---------------------------------------------------------------------------
# Pure-jnp reference (same random digits) for correctness checking.
# ---------------------------------------------------------------------------
def _reference_loss(outputs, targets, case_codes, rnd):
    logits = outputs.astype(jnp.float32)
    pred = jnp.argmax(logits, axis=1).astype(jnp.int32)
    calm, clear = pred // 125, (pred // 25) % 5
    dry, cold = (pred // 5) % 5, pred % 5
    case = case_codes.reshape(-1)
    rain_dry, snow_dry, light_calm = rnd[:, 0], rnd[:, 1], rnd[:, 2]
    is_rain, is_rime = case == 1, case == 2
    is_snow, is_light = case == 3, case == 4
    dry_n = jnp.where(is_rain, rain_dry, jnp.where(is_snow, snow_dry, dry))
    calm_rain = jnp.where(rain_dry == 2, 3, jnp.where(rain_dry >= 3, 4, calm))
    calm_n = jnp.where(is_rain, calm_rain, jnp.where(is_light, light_calm, calm))
    cold_n = jnp.where(is_rime | is_snow, 0, cold)
    rewritten = cold_n + 5 * dry_n + 25 * clear + 125 * calm_n
    new_t = jnp.where(is_rain | is_rime | is_snow | is_light, rewritten,
                      jnp.asarray(targets, jnp.int32)).astype(jnp.int32)
    lse = jax.scipy.special.logsumexp(logits, axis=1)
    picked = jnp.take_along_axis(logits, new_t[:, None], axis=1)[:, 0]
    return jnp.mean(lse - picked)


# ---------------------------------------------------------------------------
if __name__ == "__main__":
    key = jax.random.PRNGKey(0)
    (k_out1, k_tgt1, k_loss1,
     k_out2, k_tgt2, k_loss2,
     k_out3, k_tgt3, k_loss3) = jax.random.split(key, 9)

    # bf16 row-sums on the MXU bound the per-row error by ~2*2^-9 (~4e-3);
    # semantic bugs (wrong argmax / rewrite / gather) show up as O(0.1-1) shifts.
    RTOL, ATOL = 1e-3, 1e-2

    # --- Test 1: small batch, f32 logits, single tile ------------------------
    B1 = 8
    outputs1 = jax.random.normal(k_out1, (B1, NUM_CLASSES), dtype=jnp.float32)
    targets1 = jax.random.randint(k_tgt1, (B1,), 0, NUM_CLASSES, dtype=jnp.int32)
    cases1 = ["rain", "rime", "snow", "lightning", "none", "rain", "clear", "snow"]

    loss1 = custom_loss(outputs1, targets1, cases1, key=k_loss1)
    jax.block_until_ready(loss1)
    ref1 = _reference_loss(outputs1, targets1, _case_codes(cases1),
                           _draw_random_digits(k_loss1, B1))
    assert loss1.shape == () and bool(jnp.isfinite(loss1))
    assert jnp.allclose(loss1, ref1, rtol=RTOL, atol=ATOL), (loss1, ref1)

    # --- Test 2: bf16 logits, multi-tile grid with a partial last tile -------
    B2 = 20
    outputs2 = jax.random.normal(k_out2, (B2, NUM_CLASSES),
                                 dtype=jnp.float32).astype(jnp.bfloat16)
    targets2 = jax.random.randint(k_tgt2, (B2,), 0, NUM_CLASSES, dtype=jnp.int32)
    cases2 = ["rain", "rime", "snow", "lightning", "other"] * 4

    loss2 = custom_loss(outputs2, targets2, cases2, key=k_loss2)   # default tb=8, 3 steps
    jax.block_until_ready(loss2)
    ref2 = _reference_loss(outputs2, targets2, _case_codes(cases2),
                           _draw_random_digits(k_loss2, B2))
    assert loss2.shape == () and bool(jnp.isfinite(loss2))
    assert jnp.allclose(loss2, ref2, rtol=RTOL, atol=ATOL), (loss2, ref2)

    # --- Test 3: larger batch -> multi-step pipelined grid (auto tile) -------
    B3 = 300
    outputs3 = jax.random.normal(k_out3, (B3, NUM_CLASSES), dtype=jnp.float32)
    targets3 = jax.random.randint(k_tgt3, (B3,), 0, NUM_CLASSES, dtype=jnp.int32)
    cases3 = (["rain", "rime", "snow", "lightning", "none"] * 60)[:B3]

    loss3 = custom_loss(outputs3, targets3, cases3, key=k_loss3)
    jax.block_until_ready(loss3)
    ref3 = _reference_loss(outputs3, targets3, _case_codes(cases3),
                           _draw_random_digits(k_loss3, B3))
    assert loss3.shape == () and bool(jnp.isfinite(loss3))
    assert jnp.allclose(loss3, ref3, rtol=RTOL, atol=ATOL), (loss3, ref3)

    print("KERNEL_OK")
</pallas_src>

<mosaic_0001>
module attributes {stable_mosaic.version = 11 : i64} {
  func.func @_fused_loss_kernel(%arg0: i32, %arg1: memref<8x625xf32, #tpu.memory_space<vmem>>, %arg2: memref<8x8xi32, #tpu.memory_space<vmem>>, %arg3: memref<8x1xf32, #tpu.memory_space<vmem>>) attributes {dimension_semantics = [#tpu.dimension_semantics<parallel>], iteration_bounds = array<i64: 1>, scalar_prefetch = 0 : i64, scratch_operands = 0 : i64, tpu.core_type = #tpu.core_type<tc>, window_params = [{transform_indices = @transform_0, window_bounds = array<i64: 8, 625>}, {transform_indices = @transform_1, window_bounds = array<i64: 8, 8>}, {transform_indices = @transform_2, window_bounds = array<i64: 8, 1>}]} {
    %c0 = arith.constant 0 : index
    %c0_0 = arith.constant 0 : index
    %0 = vector.load %arg1[%c0, %c0_0] : memref<8x625xf32, #tpu.memory_space<vmem>>, vector<8x625xf32>
    %1 = tpu.iota {dimensions = array<i32: 1>} : vector<1x625xi32>
    %2 = arith.sitofp %1 : vector<1x625xi32> to vector<1x625xf32>
    %cst = arith.constant dense<0xFF800000> : vector<8xf32>
    %3 = vector.multi_reduction <maximumf>, %0, %cst [1] : vector<8x625xf32> to vector<8xf32>
    %4 = vector.shape_cast %3 : vector<8xf32> to vector<8x1xf32>
    %5 = vector.broadcast %4 : vector<8x1xf32> to vector<8x625xf32>
    %6 = arith.cmpf oeq, %0, %5 : vector<8x625xf32>
    %cst_1 = arith.constant 6.250000e+02 : f32
    %7 = vector.shape_cast %2 : vector<1x625xf32> to vector<1x625xf32>
    %8 = vector.broadcast %7 : vector<1x625xf32> to vector<8x625xf32>
    %9 = vector.broadcast %cst_1 : f32 to vector<8x625xf32>
    %10 = arith.select %6, %8, %9 : vector<8x625xi1>, vector<8x625xf32>
    %cst_2 = arith.constant dense<0x7F800000> : vector<8xf32>
    %11 = vector.multi_reduction <minimumf>, %10, %cst_2 [1] : vector<8x625xf32> to vector<8xf32>
    %12 = vector.shape_cast %11 : vector<8xf32> to vector<8x1xf32>
    %cst_3 = arith.constant 5.000000e-01 : f32
    %13 = vector.broadcast %cst_3 : f32 to vector<8x1xf32>
    %14 = arith.addf %12, %13 : vector<8x1xf32>
    %cst_4 = arith.constant 8.000000e-03 : f32
    %15 = vector.broadcast %cst_4 : f32 to vector<8x1xf32>
    %16 = arith.mulf %14, %15 : vector<8x1xf32>
    %17 = math.floor %16 : vector<8x1xf32>
    %cst_5 = arith.constant 4.000000e-02 : f32
    %18 = vector.broadcast %cst_5 : f32 to vector<8x1xf32>
    %19 = arith.mulf %14, %18 : vector<8x1xf32>
    %20 = math.floor %19 : vector<8x1xf32>
    %cst_6 = arith.constant 2.000000e-01 : f32
    %21 = vector.broadcast %cst_6 : f32 to vector<8x1xf32>
    %22 = arith.mulf %14, %21 : vector<8x1xf32>
    %23 = math.floor %22 : vector<8x1xf32>
    %cst_7 = arith.constant 5.000000e+00 : f32
    %24 = vector.broadcast %cst_7 : f32 to vector<8x1xf32>
    %25 = arith.mulf %24, %17 : vector<8x1xf32>
    %26 = arith.subf %20, %25 : vector<8x1xf32>
    %cst_8 = arith.constant 5.000000e+00 : f32
    %27 = vector.broadcast %cst_8 : f32 to vector<8x1xf32>
    %28 = arith.mulf %27, %20 : vector<8x1xf32>
    %29 = arith.subf %23, %28 : vector<8x1xf32>
    %cst_9 = arith.constant 5.000000e+00 : f32
    %30 = vector.broadcast %cst_9 : f32 to vector<8x1xf32>
    %31 = arith.mulf %30, %23 : vector<8x1xf32>
    %32 = arith.subf %12, %31 : vector<8x1xf32>
    %c0_10 = arith.constant 0 : index
    %c0_11 = arith.constant 0 : index
    %33 = vector.load %arg2[%c0_10, %c0_11] : memref<8x8xi32, #tpu.memory_space<vmem>>, vector<8x8xi32>
    %34 = vector.extract_strided_slice %33 {offsets = [0, 0], sizes = [8, 1], strides = [1, 1]} : vector<8x8xi32> to vector<8x1xi32>
    %35 = arith.sitofp %34 : vector<8x1xi32> to vector<8x1xf32>
    %36 = vector.extract_strided_slice %33 {offsets = [0, 1], sizes = [8, 1], strides = [1, 1]} : vector<8x8xi32> to vector<8x1xi32>
    %37 = vector.extract_strided_slice %33 {offsets = [0, 2], sizes = [8, 1], strides = [1, 1]} : vector<8x8xi32> to vector<8x1xi32>
    %38 = arith.sitofp %37 : vector<8x1xi32> to vector<8x1xf32>
    %39 = vector.extract_strided_slice %33 {offsets = [0, 3], sizes = [8, 1], strides = [1, 1]} : vector<8x8xi32> to vector<8x1xi32>
    %40 = arith.sitofp %39 : vector<8x1xi32> to vector<8x1xf32>
    %41 = vector.extract_strided_slice %33 {offsets = [0, 4], sizes = [8, 1], strides = [1, 1]} : vector<8x8xi32> to vector<8x1xi32>
    %42 = arith.sitofp %41 : vector<8x1xi32> to vector<8x1xf32>
    %c1_i32 = arith.constant 1 : i32
    %43 = vector.broadcast %c1_i32 : i32 to vector<8x1xi32>
    %44 = arith.cmpi eq, %36, %43 : vector<8x1xi32>
    %c2_i32 = arith.constant 2 : i32
    %45 = vector.broadcast %c2_i32 : i32 to vector<8x1xi32>
    %46 = arith.cmpi eq, %36, %45 : vector<8x1xi32>
    %c3_i32 = arith.constant 3 : i32
    %47 = vector.broadcast %c3_i32 : i32 to vector<8x1xi32>
    %48 = arith.cmpi eq, %36, %47 : vector<8x1xi32>
    %c4_i32 = arith.constant 4 : i32
    %49 = vector.broadcast %c4_i32 : i32 to vector<8x1xi32>
    %50 = arith.cmpi eq, %36, %49 : vector<8x1xi32>
    %51 = arith.select %48, %40, %29 : vector<8x1xi1>, vector<8x1xf32>
    %52 = arith.select %44, %38, %51 : vector<8x1xi1>, vector<8x1xf32>
    %cst_12 = arith.constant 2.000000e+00 : f32
    %53 = vector.broadcast %cst_12 : f32 to vector<8x1xf32>
    %54 = arith.cmpf oeq, %38, %53 : vector<8x1xf32>
    %cst_13 = arith.constant 3.000000e+00 : f32
    %55 = vector.broadcast %cst_13 : f32 to vector<8x1xf32>
    %56 = arith.cmpf oge, %38, %55 : vector<8x1xf32>
    %cst_14 = arith.constant 4.000000e+00 : f32
    %57 = vector.broadcast %cst_14 : f32 to vector<8x1xf32>
    %58 = arith.select %56, %57, %17 : vector<8x1xi1>, vector<8x1xf32>
    %cst_15 = arith.constant 3.000000e+00 : f32
    %59 = vector.broadcast %cst_15 : f32 to vector<8x1xf32>
    %60 = arith.select %54, %59, %58 : vector<8x1xi1>, vector<8x1xf32>
    %61 = arith.select %50, %42, %17 : vector<8x1xi1>, vector<8x1xf32>
    %62 = arith.select %44, %60, %61 : vector<8x1xi1>, vector<8x1xf32>
    %63 = arith.ori %46, %48 : vector<8x1xi1>
    %cst_16 = arith.constant 0.000000e+00 : f32
    %64 = vector.broadcast %cst_16 : f32 to vector<8x1xf32>
    %65 = arith.select %63, %64, %32 : vector<8x1xi1>, vector<8x1xf32>
    %cst_17 = arith.constant 5.000000e+00 : f32
    %66 = vector.broadcast %cst_17 : f32 to vector<8x1xf32>
    %67 = arith.mulf %66, %52 : vector<8x1xf32>
    %68 = arith.addf %65, %67 : vector<8x1xf32>
    %cst_18 = arith.constant 2.500000e+01 : f32
    %69 = vector.broadcast %cst_18 : f32 to vector<8x1xf32>
    %70 = arith.mulf %69, %26 : vector<8x1xf32>
    %71 = arith.addf %68, %70 : vector<8x1xf32>
    %cst_19 = arith.constant 1.250000e+02 : f32
    %72 = vector.broadcast %cst_19 : f32 to vector<8x1xf32>
    %73 = arith.mulf %72, %62 : vector<8x1xf32>
    %74 = arith.addf %71, %73 : vector<8x1xf32>
    %75 = arith.ori %44, %46 : vector<8x1xi1>
    %76 = arith.ori %75, %48 : vector<8x1xi1>
    %77 = arith.ori %76, %50 : vector<8x1xi1>
    %78 = arith.select %77, %74, %35 : vector<8x1xi1>, vector<8x1xf32>
    %79 = vector.broadcast %4 : vector<8x1xf32> to vector<8x625xf32>
    %80 = arith.subf %0, %79 : vector<8x625xf32>
    %81 = math.exp %80 : vector<8x625xf32>
    %82 = arith.truncf %81 : vector<8x625xf32> to vector<8x625xbf16>
    %cst_20 = arith.constant 1.000000e+00 : bf16
    %83 = vector.broadcast %cst_20 : bf16 to vector<625x128xbf16>
    %cst_21 = arith.constant dense<0.000000e+00> : vector<8x128xf32>
    %84 = tpu.matmul %82, %83, %cst_21 {dimension_numbers = #tpu.dot_dimension_numbers<[1], [0], [0], [1], [0, 0, 1, 1], [], []>} : vector<8x625xbf16>, vector<625x128xbf16>, vector<8x128xf32> -> vector<8x128xf32>
    %85 = vector.extract_strided_slice %84 {offsets = [0, 0], sizes = [8, 1], strides = [1, 1]} : vector<8x128xf32> to vector<8x1xf32>
    %86 = vector.broadcast %2 : vector<1x625xf32> to vector<8x625xf32>
    %87 = vector.broadcast %78 : vector<8x1xf32> to vector<8x625xf32>
    %88 = arith.cmpf oeq, %86, %87 : vector<8x625xf32>
    %c0_i32 = arith.constant 0 : i32
    %89 = arith.sitofp %c0_i32 : i32 to bf16
    %90 = vector.broadcast %89 : bf16 to vector<8x625xbf16>
    %91 = arith.select %88, %82, %90 : vector<8x625xi1>, vector<8x625xbf16>
    %cst_22 = arith.constant dense<0.000000e+00> : vector<8x128xf32>
    %92 = tpu.matmul %91, %83, %cst_22 {dimension_numbers = #tpu.dot_dimension_numbers<[1], [0], [0], [1], [0, 0, 1, 1], [], []>} : vector<8x625xbf16>, vector<625x128xbf16>, vector<8x128xf32> -> vector<8x128xf32>
    %93 = vector.extract_strided_slice %92 {offsets = [0, 0], sizes = [8, 1], strides = [1, 1]} : vector<8x128xf32> to vector<8x1xf32>
    %94 = math.log %85 : vector<8x1xf32>
    %95 = math.log %93 : vector<8x1xf32>
    %96 = arith.subf %94, %95 : vector<8x1xf32>
    %c0_23 = arith.constant 0 : index
    %c0_24 = arith.constant 0 : index
    %97 = vector.load %arg3[%c0_23, %c0_24] : memref<8x1xf32, #tpu.memory_space<vmem>>, vector<8x1xf32>
    tpu.vector_store %arg3[%c0_23, %c0_24], %96 {strides = array<i32>} : memref<8x1xf32, #tpu.memory_space<vmem>>, vector<8x1xf32>,
    return
  }
  func.func @transform_0(%arg0: i32) -> (i32, i32) {
    %c0_i32 = arith.constant 0 : i32
    %c0_i32_0 = arith.constant 0 : i32
    return %arg0, %c0_i32 : i32, i32
  }
  func.func @transform_1(%arg0: i32) -> (i32, i32) {
    %c0_i32 = arith.constant 0 : i32
    %c0_i32_0 = arith.constant 0 : i32
    return %arg0, %c0_i32 : i32, i32
  }
  func.func @transform_2(%arg0: i32) -> (i32, i32) {
    %c0_i32 = arith.constant 0 : i32
    %c0_i32_0 = arith.constant 0 : i32
    return %arg0, %c0_i32 : i32, i32
  }
}

</mosaic_0001>

<bundles_post_ra>
// kernel: _loss_core.1
= control target key start
LH: loop header
LB: loop body
LE: loop exit
PB: predicated region body
PF: predicated region fallthrough
CT: control target
= control target key end

     0   :  { %vm29_vm0 = vcmask 924672   ;;  %v586_v2 = vmov 1065369472   ;;  %v587_v11 = vmov 0.0   ;;  %s588_s20 = smov 126   ;;  %s589_s21 = smov 127   ;;  %v18_v14 = vlaneseq  ;;  %s860_s0 = inlined_call_operand.vmem [shape: f32[8,625], index: 0, kind: input, shape index: {}]   ;;  %s861_s1 = inlined_call_operand.vmem [shape: s32[8,8], index: 1, kind: input, shape index: {}]   ;;  %s862_s2 = inlined_call_operand.vmem [shape: f32[8,1], index: 2, kind: output, shape index: {}]  }
   0x1   :  { %v613_v0 = vld [vmem:[%s860_s0] sm:$0xff]  ;;  %v618_v1 = vld [vmem:[%s860_s0 + $0x10] sm:$0xff]  ;;  %415 = vmatprep.subr.bf16.mxu0 %v586_v2  ;;  %437 = vmatprep.subr.bf16.mxu1 %v586_v2  ;;  %v625_v3 = vld [vmem:[%s860_s0 + $0x18] sm:$0xff]  ;;  %vm133_vm6 = vcmask 1040384   ;;  %v590_v44 = vmov 0   ;;  %vm591_vm7 = vmmov 0  }
   0x2   :  { %v630_v4 = vld [vmem:[%s860_s0 + $0x20] sm:$0xff]  ;;  %416 = vmatpush3.bf16.msra.mxu0 %v586_v2  ;;  %438 = vmatpush3.bf16.msra.mxu1 %v586_v2  ;;  %v637_v5 = vld [vmem:[%s860_s0 + $0x8] sm:$0xff]  ;;  %v33_v8 = vmax.f32 %v618_v1, %v625_v3  ;;  %v686_v15 = vand.u32 127, %v18_v14  ;;  %v725_v45 = vsel %vm133_vm6, 65535, %v590_v44  ;;  %v593_v60 = vmov 1   ;;  %s594_s22 = smov 1  }
   0x3   :  { %v30_v6 = vsel %vm29_vm0, %v630_v4, -inf  ;;  %417 = vmatprep.subr.bf16.mxu0 %v586_v2  ;;  %439 = vmatprep.subr.bf16.mxu1 %v586_v2  ;;  %v678_v12 = vld [vmem:[%s861_s1] sm:$0xff]  ;;  %v137_v51 = vand.u32 1065369472, %v725_v45  ;;  %s592_s1 = smov 125  }
   0x4   :  { %v31_v7 = vmax.f32 %v613_v0, %v30_v6  ;;  %v681_v13 = vcvt.s32.f32 %v678_v12  ;;  %v689_v16 = vadd.s32 256, %v686_v15  ;;  %v692_v17 = vadd.s32 512, %v686_v15  ;;  %570 = vset.pattern.permute.xlu1 %v593_v60  ;;  %571 = vset.pattern.permute.xlu0 %v593_v60 }
   0x5   :  { %v695_v18 = vadd.s32 384, %v686_v15  ;;  %v698_v19 = vadd.s32 128, %v686_v15  ;;  %v24_v20 = vcvt.s32.f32 %v686_v15  ;;  %vm70_vm10 = vcmp.eq.s32.totalorder %v678_v12, 2 }
   0x6   :  { %v32_v9 = vmax.f32 %v31_v7, %v637_v5  ;;  %418 = vmatpush3.bf16.msra.mxu0 %v586_v2  ;;  %440 = vmatpush3.bf16.msra.mxu1 %v586_v2  ;;  %v26_v21 = vcvt.s32.f32 %v689_v16  ;;  %v28_v22 = vcvt.s32.f32 %v692_v17  ;;  %vm83_vm8 = vcmp.ge.f32.partialorder %v681_v13, 3.0 }
   0x7   :  { %419 = vmatprep.subr.bf16.mxu0 %v586_v2  ;;  %441 = vmatprep.subr.bf16.mxu1 %v586_v2  ;;  %v27_v24 = vcvt.s32.f32 %v695_v18  ;;  %v25_v25 = vcvt.s32.f32 %v698_v19  ;;  %vm82_vm9 = vcmp.eq.f32.partialorder %v681_v13, 2.0  ;;  %vm71_vm11 = vcmp.eq.s32.totalorder %v678_v12, 3 }
   0x8   :  { %v34_v10 = vmax.f32 %v32_v9, %v33_v8  ;;  %74 = vrot.lane.b32.xlu1 %v681_v13, %s588_s20  ;;  %vm69_vm12 = vcmp.eq.s32.totalorder %v678_v12, 1  ;;  %vm95_vm13 = vmor %vm70_vm10, %vm71_vm11  ;;  %vm72_vm14 = vcmp.eq.s32.totalorder %v678_v12, 4 }
   0x9   :  { %vm103_vm15 = vmor %vm69_vm12, %vm70_vm10 }
   0xa   :  { %35 = vmax.xlane.f32.xlu0 %v34_v10  ;;  %420 = vmatpush3.bf16.msra.mxu0 %v586_v2 }
   0xb   :  { %442 = vmatpush3.bf16.msra.mxu1 %v586_v2  ;;  %421 = vmatprep.subr.bf16.mxu0 %v586_v2 }
   0xc   :  { %443 = vmatprep.subr.bf16.mxu1 %v586_v2  ;;  %78 = vrot.lane.b32.xlu1 %v681_v13, %s589_s21 }
   0xe   :  { %422 = vmatpush3.bf16.msra.mxu0 %v586_v2 }
   0xf   :  { %444 = vmatpush3.bf16.msra.mxu1 %v586_v2  ;;  %423 = vmatprep.subr.bf16.mxu0 %v586_v2 }
  0x10   :  { %445 = vmatprep.subr.bf16.mxu1 %v586_v2 }
  0x12   :  { %424 = vmatpush3.bf16.msra.mxu0 %v586_v2 }
  0x13   :  { %446 = vmatpush3.bf16.msra.mxu1 %v586_v2  ;;  %425 = vmatprep.subr.bf16.mxu0 %v586_v2 }
  0x14   :  { %447 = vmatprep.subr.bf16.mxu1 %v586_v2 }
  0x16   :  { %426 = vmatpush3.bf16.msra.mxu0 %v586_v2 }
  0x17   :  { %448 = vmatpush3.bf16.msra.mxu1 %v586_v2  ;;  %427 = vmatprep.subr.bf16.mxu0 %v586_v2 }
  0x18   :  { %449 = vmatprep.subr.bf16.mxu1 %v586_v2 }
  0x1a   :  { %428 = vmatpush3.bf16.msra.mxu0 %v586_v2 }
  0x1b   :  { %450 = vmatpush3.bf16.msra.mxu1 %v586_v2  ;;  %429 = vmatprep.subr.bf16.mxu0 %v586_v2 }
  0x1c   :  { %451 = vmatprep.subr.bf16.mxu1 %v586_v2 }
  0x1e   :  { %430 = vmatpush3.bf16.msra.mxu0 %v586_v2 }
  0x1f   :  { %452 = vmatpush3.bf16.msra.mxu1 %v586_v2  ;;  %521 = vmatprep.subr.bf16.mxu0 %v587_v11 }
  0x20   :  { %468 = vmatprep.subr.bf16.mxu1 %v586_v2 }
  0x93   :  { %v36_v23 = vpop.xlane.xlu0 %35 }
  0x94   :  { %vm37_vm1 = vcmp.eq.f32.partialorder %v613_v0, %v36_v23  ;;  %vm39_vm2 = vcmp.eq.f32.partialorder %v618_v1, %v36_v23  ;;  %vm40_vm3 = vcmp.eq.f32.partialorder %v625_v3, %v36_v23  ;;  %vm38_vm4 = vcmp.eq.f32.partialorder %v637_v5, %v36_v23 }
  0x95   :  { %vm41_vm5 = vcmp.eq.f32.partialorder %v630_v4, %v36_v23  ;;  %v42_v26 = vsel %vm37_vm1, %v24_v20, 625.0  ;;  %v44_v27 = vsel %vm39_vm2, %v26_v21, 625.0  ;;  %v111_v29 = vsub.f32 %v637_v5, %v36_v23  ;;  %vm104_vm1 = vmor %vm103_vm15, %vm71_vm11 }
  0x96   :  { %v46_v28 = vsel %vm41_vm5, %v28_v22, 625.0  ;;  %v113_v30 = vsub.f32 %v625_v3, %v36_v23  ;;  %v45_v31 = vsel %vm40_vm3, %v27_v24, 625.0  ;;  %v110_v33 = vsub.f32 %v613_v0, %v36_v23  ;;  %vm105_vm2 = vmor %vm104_vm1, %vm72_vm14 }
  0x97   :  { %v47_v32 = vsel %vm29_vm0, %v46_v28, inf  ;;  %v112_v34 = vsub.f32 %v618_v1, %v36_v23  ;;  %v117_v36 = vmul.f32 1.442695, %v111_v29  ;;  %v43_v38 = vsel %vm38_vm4, %v25_v25, 625.0  ;;  %v75_v1 = vpop.permute.xlu1 %74 }
  0x98   :  { %v48_v35 = vmin.f32 %v42_v26, %v47_v32  ;;  %v121_v37 = vmul.f32 1.442695, %v113_v30  ;;  %v115_v39 = vmul.f32 1.442695, %v110_v33  ;;  %v50_v42 = vmin.f32 %v44_v27, %v45_v31 }
  0x99   :  { %v119_v40 = vmul.f32 1.442695, %v112_v34  ;;  %572 = vpow2.f32 %v117_v36  ;;  %v114_v55 = vsub.f32 %v630_v4, %v36_v23 }
  0x9a   :  { %v49_v41 = vmin.f32 %v48_v35, %v43_v38  ;;  %574 = vpow2.f32 %v121_v37 }
  0x9b   :  { %576 = vpow2.f32 %v115_v39  ;;  %v123_v56 = vmul.f32 1.442695, %v114_v55  ;;  %v79_v26 = vpop.permute.xlu1 %78 }
  0x9c   :  { %v51_v43 = vmin.f32 %v49_v41, %v50_v42  ;;  %578 = vpow2.f32 %v119_v40 }
  0x9d   :  { %580 = vpow2.f32 %v123_v56 }
  0x9e   :  { %52 = vmin.xlane.f32.xlu0 %v51_v43 }
  0xa6   :  { %v573_v46 = vpop.eup %572 }
  0xa7   :  { %v575_v47 = vpop.eup %574  ;;  %v727_v48 = vpack.c.bf16 %v573_v46, %v573_v46 }
  0xa8   :  { %v577_v49 = vpop.eup %576  ;;  %v729_v50 = vpack.c.bf16 %v575_v47, %v575_v47 }
  0xa9   :  { %v579_v52 = vpop.eup %578  ;;  %171 = vmatprep.mubr.bf16.mxu0 %v727_v48  ;;  %v733_v53 = vpack.c.bf16 %v577_v49, %v577_v49 }
  0xaa   :  { %211 = vmatprep.mubr.bf16.mxu1 %v729_v50  ;;  %v736_v54 = vpack.c.bf16 %v579_v52, %v579_v52  ;;  %v581_v57 = vpop.eup %580 }
  0xab   :  { %172 = vmatmul.mubr.bf16.vlgmr.msra.gmra.mxu0 %v733_v53  ;;  %v774_v58 = vpack.c.bf16 %v581_v57, %v581_v57 }
  0xac   :  { %212 = vmatmul.mubr.bf16.vlgmr.msra.gmra.mxu1 %v736_v54  ;;  %522 = vmatpush3.bf16.msra.mxu0 %v137_v51 }
  0xad   :  { %523 = vmatprep.subr.bf16.mxu0 %v587_v11  ;;  %537 = vmatprep.mubr.msk.bf16.mxu0 %vm591_vm7, %v587_v11 }
  0xae   :  { %469 = vmatpush3.bf16.msra.mxu1 %v586_v2 }
  0xaf   :  { %470 = vmatprep.subr.bf16.mxu1 %v586_v2 }
  0xb0   :  { %524 = vmatpush3.bf16.msra.mxu0 %v586_v2 }
  0xb1   :  { %525 = vmatprep.subr.bf16.mxu0 %v587_v11 }
  0xb2   :  { %471 = vmatpush3.bf16.msra.mxu1 %v586_v2 }
  0xb3   :  { %472 = vmatprep.subr.bf16.mxu1 %v586_v2 }
  0xb4   :  { %86 = vrot.lane.b32.xlu0 %v681_v13, %s592_s1  ;;  %526 = vmatpush3.bf16.msra.mxu0 %v586_v2 }
  0xb5   :  { %527 = vmatprep.subr.bf16.mxu0 %v587_v11 }
  0xb6   :  { %473 = vmatpush3.bf16.msra.mxu1 %v586_v2 }
  0xb7   :  { %474 = vmatprep.subr.bf16.mxu1 %v586_v2 }
  0xb8   :  { %528 = vmatpush3.bf16.msra.mxu0 %v586_v2 }
  0xb9   :  { %529 = vmatprep.subr.bf16.mxu0 %v587_v11 }
  0xba   :  { %475 = vmatpush3.bf16.msra.mxu1 %v586_v2 }
  0xbb   :  { %476 = vmatprep.subr.bf16.mxu1 %v586_v2 }
  0xbc   :  { %530 = vmatpush3.bf16.msra.mxu0 %v586_v2 }
  0xbd   :  { %531 = vmatprep.subr.bf16.mxu0 %v587_v11 }
  0xbe   :  { %477 = vmatpush3.bf16.msra.mxu1 %v586_v2 }
  0xbf   :  { %478 = vmatprep.subr.bf16.mxu1 %v586_v2 }
  0xc0   :  { %532 = vmatpush3.bf16.msra.mxu0 %v586_v2 }
  0xc1   :  { %533 = vmatprep.subr.bf16.mxu0 %v587_v11 }
  0xc2   :  { %479 = vmatpush3.bf16.msra.mxu1 %v586_v2 }
  0xc3   :  { %480 = vmatprep.subr.bf16.mxu1 %v586_v2 }
  0xc4   :  { %534 = vmatpush3.bf16.msra.mxu0 %v586_v2 }
  0xc5   :  { %535 = vmatprep.subr.bf16.mxu0 %v587_v11 }
  0xc6   :  { %481 = vmatpush3.bf16.msra.mxu1 %v586_v2 }
  0xc7   :  { %482 = vmatprep.subr.bf16.mxu1 %v586_v2 }
  0xc8   :  { %536 = vmatpush3.bf16.msra.mxu0 %v586_v2 }
  0xc9   :  { %490 = vmatprep.subr.bf16.mxu0 %v586_v2 }
  0xca   :  { %483 = vmatpush3.bf16.msra.mxu1 %v586_v2 }
  0xcb   :  { %538 = vmatmul.mubr.msk.bf16.vlgmr.msra.gmra.mxu0 %vm29_vm0, %v774_v58  ;;  %541 = vmatprep.subr.bf16.mxu1 %v587_v11 }
  0xcc   :  { %491 = vmatpush3.bf16.msra.mxu0 %v586_v2 }
  0xcd   :  { %492 = vmatprep.subr.bf16.mxu0 %v586_v2 }
  0xd0   :  { %493 = vmatpush3.bf16.msra.mxu0 %v586_v2 }
  0xd1   :  { %494 = vmatprep.subr.bf16.mxu0 %v586_v2 }
  0xd4   :  { %495 = vmatpush3.bf16.msra.mxu0 %v586_v2 }
  0xd5   :  { %496 = vmatprep.subr.bf16.mxu0 %v586_v2 }
  0xd8   :  { %497 = vmatpush3.bf16.msra.mxu0 %v586_v2 }
  0xd9   :  { %498 = vmatprep.subr.bf16.mxu0 %v586_v2 }
  0xdc   :  { %499 = vmatpush3.bf16.msra.mxu0 %v586_v2 }
  0xdd   :  { %500 = vmatprep.subr.bf16.mxu0 %v586_v2 }
  0xe0   :  { %501 = vmatpush3.bf16.msra.mxu0 %v586_v2 }
  0xe1   :  { %502 = vmatprep.subr.bf16.mxu0 %v586_v2 }
  0xe4   :  { %503 = vmatpush3.bf16.msra.mxu0 %v586_v2 }
  0xe5   :  { %504 = vmatprep.subr.bf16.mxu0 %v586_v2 }
  0xe8   :  { %505 = vmatpush3.bf16.msra.mxu0 %v586_v2 }
 0x127   :  { %v53_v59 = vpop.xlane.xlu0 %52 }
 0x128   :  { %v54_v61 = vadd.f32 0.5, %v53_v59 }
 0x12a   :  { %v55_v62 = vmul.f32 0.008, %v54_v61  ;;  %v57_v63 = vmul.f32 0.04, %v54_v61  ;;  %v59_v0 = vmul.f32 0.2, %v54_v61 }
 0x12b   :  { %v87_v56 = vpop.permute.xlu0 %86 }
 0x12c   :  { %v58_v3 = vfloor.f32 %v57_v63  ;;  %v60_v4 = vfloor.f32 %v59_v0  ;;  %v56_v5 = vfloor.f32 %v55_v62 }
 0x12e   :  { %v65_v6 = vmul.f32 5.0, %v60_v4  ;;  %v63_v7 = vmul.f32 5.0, %v58_v3  ;;  %v84_v8 = vsel %vm83_vm8, 4.0, %v56_v5  ;;  %v61_v10 = vmul.f32 5.0, %v56_v5 }
 0x12f   :  { %v85_v9 = vsel %vm82_vm9, 3.0, %v84_v8  ;;  %v89_v57 = vsel %vm72_vm14, %v87_v56, %v56_v5 }
 0x130   :  { %v66_v14 = vsub.f32 %v53_v59, %v65_v6  ;;  %v64_v23 = vsub.f32 %v60_v4, %v63_v7  ;;  %91 = vrot.lane.b32.xlu1 %v85_v9, %s589_s21  ;;  %v62_v27 = vsub.f32 %v58_v3, %v61_v10 }
 0x132   :  { %v77_v28 = vsel %vm71_vm11, %v75_v1, %v64_v23  ;;  %v96_v31 = vsel %vm95_vm13, 0.0, %v66_v14  ;;  %v99_v33 = vmul.f32 25.0, %v62_v27 }
 0x133   :  { %v81_v29 = vsel %vm69_vm12, %v79_v26, %v77_v28 }
 0x134   :  { %v97_v30 = vmul.f32 5.0, %v81_v29  ;;  %106 = vrot.lane.b32.xlu1 %v681_v13, %s594_s22 }
 0x136   :  { %v98_v32 = vadd.f32 %v97_v30, %v96_v31 }
 0x138   :  { %v100_v34 = vadd.f32 %v99_v33, %v98_v32 }
 0x16b   :  { %v431_v35 = vpop.f32.mrf.mxu0 }
 0x16c   :  { %v453_v36 = vpop.f32.mrf.mxu1 }
 0x16d   :  { %v432_v37 = vpop.f32.mrf.mxu0 }
 0x16e   :  { %v433_v38 = vadd.f32 %v432_v37, %v431_v35  ;;  %v454_v39 = vpop.f32.mrf.mxu1 }
 0x16f   :  { %v455_v40 = vadd.f32 %v454_v39, %v453_v36  ;;  %v434_v41 = vpop.f32.mrf.mxu0 }
 0x170   :  { %v456_v42 = vpop.f32.mrf.mxu1 }
 0x171   :  { %v435_v43 = vpop.f32.mrf.mxu0  ;;  %v214_v44 = vadd.f32 %v455_v40, %v433_v38 }
 0x172   :  { %v457_v46 = vpop.f32.mrf.mxu1 }
 0x18b   :  { %v253_v47 = vpop.f32.mrf.mxu0 }
 0x18c   :  { %v811_v49 = vadd.f32 %v253_v47, %v214_v44 }
 0x18d   :  { %v539_v52 = vpop.f32.mrf.mxu0 }
 0x18e   :  { %582 = vlog2.f32 %v811_v49 }
 0x18f   :  { %v256_v13 = vpop.f32.mrf.mxu0 }
 0x191   :  { %v540_v55 = vpop.f32.mrf.mxu0 }
 0x19b   :  { %v583_v4 = vpop.eup %582 }
 0x19c   :  { %v403_v6 = vmul.f32 0.6931472, %v583_v4 }
 0x1a2   :  { %v92_v59 = vpop.permute.xlu1 %91 }
 0x1a3   :  { %v94_v60 = vsel %vm69_vm12, %v92_v59, %v89_v57 }
 0x1a4   :  { %v101_v61 = vmul.f32 125.0, %v94_v60 }
 0x1a6   :  { %v102_v62 = vadd.f32 %v101_v61, %v100_v34  ;;  %v107_v63 = vpop.permute.xlu1 %106 }
 0x1a8   :  { %v109_v0 = vsel %vm105_vm2, %v102_v62, %v107_v63 }
 0x1a9   :  { %261 = vperm.xlu1 %570, %v109_v0  }
 0x224   :  { %v262_v1 = vpop.permute.xlu1 %261 }
 0x225   :  { %vm265_vm3 = vcmp.eq.f32.partialorder %v25_v25, %v262_v1  ;;  %vm267_vm4 = vcmp.eq.f32.partialorder %v27_v24, %v262_v1  ;;  %vm264_vm5 = vcmp.eq.f32.partialorder %v24_v20, %v262_v1  ;;  %vm266_vm8 = vcmp.eq.f32.partialorder %v26_v21, %v262_v1 }
 0x226   :  { %vm270_vm6 = vmpackc.low %vm265_vm3, %vm265_vm3 }
 0x227   :  { %v275_v12 = vsel %vm270_vm6, %v727_v48, 0  ;;  %vm272_vm9 = vmpackc.low %vm267_vm4, %vm267_vm4 }
 0x228   :  { %314 = vmatprep.mubr.bf16.mxu1 %v275_v12  ;;  %v277_v3 = vsel %vm272_vm9, %v729_v50, 0  ;;  %vm269_vm10 = vmpackc.low %vm264_vm5, %vm264_vm5 }
 0x229   :  { %354 = vmatprep.mubr.bf16.mxu0 %v277_v3  ;;  %v274_v19 = vsel %vm269_vm10, %v733_v53, 0  ;;  %vm271_vm11 = vmpackc.low %vm266_vm8, %vm266_vm8 }
 0x22a   :  { %315 = vmatmul.mubr.bf16.vlgmr.msra.gmra.mxu1 %v274_v19  ;;  %v276_v18 = vsel %vm271_vm11, %v736_v54, 0 }
 0x22b   :  { %355 = vmatmul.mubr.bf16.vlgmr.msra.gmra.mxu0 %v276_v18  ;;  %542 = vmatpush3.bf16.msra.mxu1 %v137_v51 }
 0x22c   :  { %543 = vmatprep.subr.bf16.mxu1 %v587_v11  ;;  %557 = vmatprep.mubr.msk.bf16.mxu1 %vm591_vm7, %v587_v11  ;;  %vm268_vm7 = vcmp.eq.f32.partialorder %v28_v22, %v262_v1 }
 0x22d   :  { %vm273_vm12 = vmpackc.low %vm268_vm7, %vm268_vm7 }
 0x22e   :  { %v278_v15 = vsel %vm273_vm12, %v774_v58, 0 }
 0x22f   :  { %544 = vmatpush3.bf16.msra.mxu1 %v586_v2 }
 0x230   :  { %545 = vmatprep.subr.bf16.mxu1 %v587_v11 }
 0x233   :  { %546 = vmatpush3.bf16.msra.mxu1 %v586_v2 }
 0x234   :  { %547 = vmatprep.subr.bf16.mxu1 %v587_v11 }
 0x237   :  { %548 = vmatpush3.bf16.msra.mxu1 %v586_v2 }
 0x238   :  { %549 = vmatprep.subr.bf16.mxu1 %v587_v11 }
 0x23b   :  { %550 = vmatpush3.bf16.msra.mxu1 %v586_v2 }
 0x23c   :  { %551 = vmatprep.subr.bf16.mxu1 %v587_v11 }
 0x23f   :  { %552 = vmatpush3.bf16.msra.mxu1 %v586_v2 }
 0x240   :  { %553 = vmatprep.subr.bf16.mxu1 %v587_v11 }
 0x243   :  { %554 = vmatpush3.bf16.msra.mxu1 %v586_v2 }
 0x244   :  { %555 = vmatprep.subr.bf16.mxu1 %v587_v11 }
 0x247   :  { %556 = vmatpush3.bf16.msra.mxu1 %v586_v2 }
 0x24a   :  { %558 = vmatmul.mubr.msk.bf16.vlgmr.msra.gmra.mxu1 %vm29_vm0, %v278_v15  ;;  %vm407_vm0 = vcmask 7168  }
 0x2ea   :  { %v484_v16 = vpop.f32.mrf.mxu1 }
 0x2eb   :  { %v506_v20 = vpop.f32.mrf.mxu0 }
 0x2ec   :  { %v485_v21 = vpop.f32.mrf.mxu1 }
 0x2ed   :  { %v507_v24 = vpop.f32.mrf.mxu0  ;;  %v486_v22 = vadd.f32 %v485_v21, %v484_v16 }
 0x2ee   :  { %v487_v25 = vpop.f32.mrf.mxu1  ;;  %v508_v50 = vadd.f32 %v507_v24, %v506_v20 }
 0x2ef   :  { %v509_v45 = vpop.f32.mrf.mxu0 }
 0x2f0   :  { %v488_v48 = vpop.f32.mrf.mxu1  ;;  %v357_v51 = vadd.f32 %v508_v50, %v486_v22 }
 0x2f1   :  { %v510_v17 = vpop.f32.mrf.mxu0 }
 0x30a   :  { %v396_v53 = vpop.f32.mrf.mxu1 }
 0x30b   :  { %v397_v11 = vadd.f32 %v396_v53, %v357_v51 }
 0x30c   :  { %v559_v2 = vpop.f32.mrf.mxu1 }
 0x30d   :  { %584 = vlog2.f32 %v397_v11 }
 0x30e   :  { %v399_v54 = vpop.f32.mrf.mxu1 }
 0x310   :  { %v560_v58 = vpop.f32.mrf.mxu1 }
 0x31a   :  { %v585_v5 = vpop.eup %584 }
 0x31b   :  { %v405_v7 = vmul.f32 0.6931472, %v585_v5 }
 0x31d   :  { %v406_v8 = vsub.f32 %v403_v6, %v405_v7 }
 0x31f   :  { %408 = vst.msk [vmem:[%s862_s2] sm:$0xff] %vm407_vm0, %v406_v8 }

</bundles_post_ra>
